<compile_context>
chip_gen: v7x
topology: tpu7x:2x2x1
jax: 0.10.0
libtpu: 0.0.40
codegen_flags: <defaults>
</compile_context>

<pallas_src>
import functools

import jax
import jax.numpy as jnp
from jax.experimental import pallas as pl
from jax.experimental.pallas import tpu as pltpu


def _bigram_logits_kernel(idx_ref, row_ref, logits_ref):
    """targets=None path: pure gather, no loss math."""
    del idx_ref  # only used by the index_map (scalar prefetch in SMEM)
    logits_ref[...] = row_ref[...]


def _bigram_loss_kernel(idx_ref, tgt_ref, row_ref, logits_ref, loss_ref, *, inv_n):
    """Gather one table row + accumulate its cross-entropy contribution."""
    del idx_ref  # only used by the index_map (scalar prefetch in SMEM)
    i = pl.program_id(0)

    row = row_ref[...]                       # (1, 1, V) f32 gathered table row
    logits_ref[...] = row                    # lane-dense logits writeback

    @pl.when(i == 0)
    def _init():
        loss_ref[...] = jnp.zeros_like(loss_ref)

    # logsumexp(row) - row[target], no one-hot materialization.
    m = jnp.max(row, axis=-1, keepdims=True)                         # (1,1,1)
    s = jnp.sum(jnp.exp(row - m), axis=-1, keepdims=True)            # (1,1,1)
    lse = m + jnp.log(s)                                             # (1,1,1)

    tgt = tgt_ref[i]                                                 # SMEM scalar
    col = jax.lax.broadcasted_iota(jnp.int32, row.shape, 2)
    picked = jnp.sum(jnp.where(col == tgt, row, 0.0),
                     axis=-1, keepdims=True)                         # (1,1,1)

    loss_ref[...] += lse - picked

    @pl.when(i == pl.num_programs(0) - 1)
    def _finalize():
        loss_ref[...] *= inv_n               # precomputed 1/N (mean reduction)


def bigram_forward(idx, table, targets=None):
    """Mirrors BigramLanguageModel.forward.

    Returns (logits, loss):
      - targets is None:  logits has shape (B, T, V), loss is None
      - targets provided: logits has shape (B*T, V), loss is a scalar
        (matches PyTorch, which returns the reshaped view in that branch).
    """
    B, T = idx.shape
    V = table.shape[0]
    N = B * T

    idx_flat = idx.reshape(N).astype(jnp.int32)
    table3d = table.astype(jnp.float32).reshape(V, 1, V)

    if targets is None:
        logits = pl.pallas_call(
            _bigram_logits_kernel,
            out_shape=jax.ShapeDtypeStruct((N, 1, V), jnp.float32),
            grid_spec=pltpu.PrefetchScalarGridSpec(
                num_scalar_prefetch=1,
                grid=(N,),
                in_specs=[
                    pl.BlockSpec((1, 1, V), lambda i, idx_ref: (idx_ref[i], 0, 0)),
                ],
                out_specs=pl.BlockSpec((1, 1, V), lambda i, idx_ref: (i, 0, 0)),
            ),
            compiler_params=pltpu.CompilerParams(
                dimension_semantics=("parallel",)),
        )(idx_flat, table3d)
        return logits.reshape(B, T, V), None

    tgt_flat = targets.reshape(N).astype(jnp.int32)
    kernel = functools.partial(_bigram_loss_kernel, inv_n=float(1.0 / N))

    logits, loss = pl.pallas_call(
        kernel,
        out_shape=(
            jax.ShapeDtypeStruct((N, 1, V), jnp.float32),
            jax.ShapeDtypeStruct((1, 1, 1), jnp.float32),
        ),
        grid_spec=pltpu.PrefetchScalarGridSpec(
            num_scalar_prefetch=2,
            grid=(N,),
            in_specs=[
                pl.BlockSpec((1, 1, V),
                             lambda i, idx_ref, tgt_ref: (idx_ref[i], 0, 0)),
            ],
            out_specs=(
                pl.BlockSpec((1, 1, V),
                             lambda i, idx_ref, tgt_ref: (i, 0, 0)),
                pl.BlockSpec((1, 1, 1),
                             lambda i, idx_ref, tgt_ref: (0, 0, 0)),
            ),
        ),
        compiler_params=pltpu.CompilerParams(
            dimension_semantics=("arbitrary",)),  # loss accumulates across grid
    )(idx_flat, tgt_flat, table3d)

    return logits.reshape(N, V), loss[0, 0, 0]


if __name__ == "__main__":
    # Small, deterministic problem: batch=2, seq=8, vocab=128.
    B, T, V = 2, 8, 128
    key = jax.random.PRNGKey(0)
    k_tab, k_idx, k_tgt = jax.random.split(key, 3)

    # nn.Embedding default init ~ N(0, 1).
    table = jax.random.normal(k_tab, (V, V), dtype=jnp.float32)
    idx = jax.random.randint(k_idx, (B, T), 0, V, dtype=jnp.int32)
    targets = jax.random.randint(k_tgt, (B, T), 0, V, dtype=jnp.int32)

    # Training branch: logits (B*T, V) + scalar loss.
    logits, loss = bigram_forward(idx, table, targets)
    logits = jax.block_until_ready(logits)
    loss = jax.block_until_ready(loss)

    # Pure-JAX reference check.
    ref_logits = table[idx.reshape(-1)]                              # (B*T, V)
    ref_lse = jax.scipy.special.logsumexp(ref_logits, axis=-1)
    ref_picked = jnp.take_along_axis(
        ref_logits, targets.reshape(-1, 1), axis=-1)[:, 0]
    ref_loss = jnp.mean(ref_lse - ref_picked)

    assert logits.shape == (B * T, V)
    assert jnp.allclose(logits, ref_logits, atol=1e-5, rtol=1e-5)
    assert jnp.allclose(loss, ref_loss, atol=1e-5, rtol=1e-5)

    # Inference branch: logits only (B, T, V), loss is None, no CE work done.
    logits_only, no_loss = bigram_forward(idx, table, None)
    logits_only = jax.block_until_ready(logits_only)
    assert logits_only.shape == (B, T, V)
    assert no_loss is None
    assert jnp.allclose(logits_only.reshape(B * T, V), ref_logits,
                        atol=1e-5, rtol=1e-5)

    print("KERNEL_OK")
</pallas_src>

<mosaic_0001>
module attributes {stable_mosaic.version = 11 : i64} {
  func.func @_bigram_loss_kernel(%arg0: i32, %arg1: memref<16xi32, #tpu.memory_space<smem>>, %arg2: memref<16xi32, #tpu.memory_space<smem>>, %arg3: memref<1x1x128xf32, #tpu.memory_space<vmem>>, %arg4: memref<1x1x128xf32, #tpu.memory_space<vmem>>, %arg5: memref<1x1x1xf32, #tpu.memory_space<vmem>>) attributes {dimension_semantics = [#tpu.dimension_semantics<arbitrary>], iteration_bounds = array<i64: 16>, scalar_prefetch = 2 : i64, scratch_operands = 0 : i64, tpu.core_type = #tpu.core_type<tc>, window_params = [{transform_indices = @transform_0, window_bounds = array<i64: 1, 1, 128>}, {transform_indices = @transform_1, window_bounds = array<i64: 1, 1, 128>}, {pipeline_mode = #tpu.pipeline_mode<synchronous>, transform_indices = @transform_2, window_bounds = array<i64: 1, 1, 1>}]} {
    %c0 = arith.constant 0 : index
    %c0_0 = arith.constant 0 : index
    %c0_1 = arith.constant 0 : index
    %0 = vector.load %arg3[%c0, %c0_0, %c0_1] : memref<1x1x128xf32, #tpu.memory_space<vmem>>, vector<1x1x128xf32>
    %c0_2 = arith.constant 0 : index
    %c0_3 = arith.constant 0 : index
    %c0_4 = arith.constant 0 : index
    %1 = vector.load %arg4[%c0_2, %c0_3, %c0_4] : memref<1x1x128xf32, #tpu.memory_space<vmem>>, vector<1x1x128xf32>
    tpu.vector_store %arg4[%c0_2, %c0_3, %c0_4], %0 {strides = array<i32>} : memref<1x1x128xf32, #tpu.memory_space<vmem>>, vector<1x1x128xf32>,
    %c0_i32 = arith.constant 0 : i32
    %2 = arith.cmpi eq, %arg0, %c0_i32 : i32
    %3 = arith.extui %2 : i1 to i32
    %c0_i32_5 = arith.constant 0 : i32
    %4 = arith.cmpi ne, %3, %c0_i32_5 : i32
    scf.if %4 {
      %cst_16 = arith.constant 0.000000e+00 : f32
      %30 = vector.broadcast %cst_16 : f32 to vector<1x1x1xf32>
      %c0_17 = arith.constant 0 : index
      %c0_18 = arith.constant 0 : index
      %c0_19 = arith.constant 0 : index
      %31 = vector.load %arg5[%c0_17, %c0_18, %c0_19] : memref<1x1x1xf32, #tpu.memory_space<vmem>>, vector<1x1x1xf32>
      tpu.vector_store %arg5[%c0_17, %c0_18, %c0_19], %30 {strides = array<i32>} : memref<1x1x1xf32, #tpu.memory_space<vmem>>, vector<1x1x1xf32>,
    } else {
    }
    %cst = arith.constant dense<0xFF800000> : vector<1x1xf32>
    %5 = vector.multi_reduction <maximumf>, %0, %cst [2] : vector<1x1x128xf32> to vector<1x1xf32>
    %6 = vector.shape_cast %5 : vector<1x1xf32> to vector<1x1x1xf32>
    %7 = vector.broadcast %6 : vector<1x1x1xf32> to vector<1x1x128xf32>
    %8 = arith.subf %0, %7 : vector<1x1x128xf32>
    %9 = math.exp %8 : vector<1x1x128xf32>
    %cst_6 = arith.constant dense<0.000000e+00> : vector<1x1xf32>
    %10 = vector.multi_reduction <add>, %9, %cst_6 [2] : vector<1x1x128xf32> to vector<1x1xf32>
    %11 = vector.shape_cast %10 : vector<1x1xf32> to vector<1x1x1xf32>
    %12 = math.log %11 : vector<1x1x1xf32>
    %13 = arith.addf %6, %12 : vector<1x1x1xf32>
    %14 = arith.index_cast %arg0 : i32 to index
    %15 = memref.load %arg2[%14] : memref<16xi32, #tpu.memory_space<smem>>
    %16 = tpu.iota {dimensions = array<i32: 2>} : vector<1x1x128xi32>
    %17 = vector.broadcast %15 : i32 to vector<1x1x128xi32>
    %18 = arith.cmpi eq, %16, %17 : vector<1x1x128xi32>
    %cst_7 = arith.constant 0.000000e+00 : f32
    %19 = vector.broadcast %cst_7 : f32 to vector<1x1x128xf32>
    %20 = arith.select %18, %0, %19 : vector<1x1x128xi1>, vector<1x1x128xf32>
    %cst_8 = arith.constant dense<0.000000e+00> : vector<1x1xf32>
    %21 = vector.multi_reduction <add>, %20, %cst_8 [2] : vector<1x1x128xf32> to vector<1x1xf32>
    %22 = vector.shape_cast %21 : vector<1x1xf32> to vector<1x1x1xf32>
    %c0_9 = arith.constant 0 : index
    %c0_10 = arith.constant 0 : index
    %c0_11 = arith.constant 0 : index
    %23 = vector.load %arg5[%c0_9, %c0_10, %c0_11] : memref<1x1x1xf32, #tpu.memory_space<vmem>>, vector<1x1x1xf32>
    %24 = arith.subf %13, %22 : vector<1x1x1xf32>
    %25 = arith.addf %23, %24 : vector<1x1x1xf32>
    %c0_12 = arith.constant 0 : index
    %c0_13 = arith.constant 0 : index
    %c0_14 = arith.constant 0 : index
    %26 = vector.load %arg5[%c0_12, %c0_13, %c0_14] : memref<1x1x1xf32, #tpu.memory_space<vmem>>, vector<1x1x1xf32>
    tpu.vector_store %arg5[%c0_12, %c0_13, %c0_14], %25 {strides = array<i32>} : memref<1x1x1xf32, #tpu.memory_space<vmem>>, vector<1x1x1xf32>,
    %c15_i32 = arith.constant 15 : i32
    %27 = arith.cmpi eq, %arg0, %c15_i32 : i32
    %28 = arith.extui %27 : i1 to i32
    %c0_i32_15 = arith.constant 0 : i32
    %29 = arith.cmpi ne, %28, %c0_i32_15 : i32
    scf.if %29 {
      %c0_16 = arith.constant 0 : index
      %c0_17 = arith.constant 0 : index
      %c0_18 = arith.constant 0 : index
      %30 = vector.load %arg5[%c0_16, %c0_17, %c0_18] : memref<1x1x1xf32, #tpu.memory_space<vmem>>, vector<1x1x1xf32>
      %cst_19 = arith.constant 6.250000e-02 : f32
      %31 = vector.broadcast %cst_19 : f32 to vector<1x1x1xf32>
      %32 = arith.mulf %30, %31 : vector<1x1x1xf32>
      %c0_20 = arith.constant 0 : index
      %c0_21 = arith.constant 0 : index
      %c0_22 = arith.constant 0 : index
      %33 = vector.load %arg5[%c0_20, %c0_21, %c0_22] : memref<1x1x1xf32, #tpu.memory_space<vmem>>, vector<1x1x1xf32>
      tpu.vector_store %arg5[%c0_20, %c0_21, %c0_22], %32 {strides = array<i32>} : memref<1x1x1xf32, #tpu.memory_space<vmem>>, vector<1x1x1xf32>,
    } else {
    }
    return
  }
  func.func @transform_0(%arg0: i32, %arg1: memref<16xi32, #tpu.memory_space<smem>>, %arg2: memref<16xi32, #tpu.memory_space<smem>>) -> (i32, i32, i32) {
    %0 = arith.index_cast %arg0 : i32 to index
    %1 = memref.load %arg1[%0] : memref<16xi32, #tpu.memory_space<smem>>
    %c0_i32 = arith.constant 0 : i32
    %c0_i32_0 = arith.constant 0 : i32
    %c0_i32_1 = arith.constant 0 : i32
    return %1, %c0_i32, %c0_i32_0 : i32, i32, i32
  }
  func.func @transform_1(%arg0: i32, %arg1: memref<16xi32, #tpu.memory_space<smem>>, %arg2: memref<16xi32, #tpu.memory_space<smem>>) -> (i32, i32, i32) {
    %c0_i32 = arith.constant 0 : i32
    %c0_i32_0 = arith.constant 0 : i32
    %c0_i32_1 = arith.constant 0 : i32
    return %arg0, %c0_i32, %c0_i32_0 : i32, i32, i32
  }
  func.func @transform_2(%arg0: i32, %arg1: memref<16xi32, #tpu.memory_space<smem>>, %arg2: memref<16xi32, #tpu.memory_space<smem>>) -> (i32, i32, i32) {
    %c0_i32 = arith.constant 0 : i32
    %c0_i32_0 = arith.constant 0 : i32
    %c0_i32_1 = arith.constant 0 : i32
    %c0_i32_2 = arith.constant 0 : i32
    return %c0_i32, %c0_i32_0, %c0_i32_1 : i32, i32, i32
  }
}

</mosaic_0001>

<bundles_post_ra>
// kernel: tpu_custom_call.1
= control target key start
LH: loop header
LB: loop body
LE: loop exit
PB: predicated region body
PF: predicated region fallthrough
CT: control target
= control target key end

     0   :  { %s854_s0 = inlined_call_operand.hbm [shape: s32[16], index: 0, kind: input, shape index: {}]   ;;  %s855_s2 = inlined_call_operand.hbm [shape: f32[128,1,128], index: 2, kind: input, shape index: {}]   ;;  %s856_s3 = inlined_call_operand.hbm [shape: f32[16,1,128], index: 3, kind: output, shape index: {0}]   ;;  %s857_s4 = inlined_call_operand.hbm [shape: f32[1,1,1], index: 4, kind: output, shape index: {1}]   ;;  %s858_s1 = inlined_call_operand.vmem [shape: s32[16], index: 1, kind: input, shape index: {}]  }
   0x1   :  { %s408_s17 = scalar_lea.hbm %s854_s0, 16 }
   0x2   :  { %p409_p0 = scmp.ne.s32.totalorder %s854_s0, %s408_s17  ;;  %p412_p1 = scmp.lt.u32.totalorder %s408_s17, %s854_s0 }
   0x4   :  { %p414_p2 = pnand %p412_p1, %p409_p0 }
   0x6   :  { %417 = shalt.err (!%p414_p2)  }
   0x7   :  { %s584_s22 = smov [#allocation3]   ;;  %s12_s27 = sshll.u32 %s858_s1, 4  ;;  %s13_s27 = int_to_ptr.vmem [resolvable:$true] %s12_s27 }
   0x8   :  { %11 = dma.hbm_to_smem %s854_s0, 16, %s584_s22, [#allocation2] }
   0x9   :  { %s418_s28 = scalar_lea.vmem %s13_s27, 16  ;;  %p423_p4 = scmp.lt.s32.totalorder %s13_s27, %s13_s27 }
   0xa   :  { %p419_p3 = scmp.ne.s32.totalorder %s13_s27, %s418_s28  ;;  %p424_p5 = scmp.lt.s32.totalorder %s418_s28, %s418_s28 }
   0xc   :  { %p425_p6 = por %p424_p5, %p423_p4 }
   0xe   :  { %p426_p7 = pnand %p425_p6, %p419_p3 }
  0x10   :  { %429 = shalt.err (!%p426_p7)  }
  0x11   :  { %s585_s29 = smov [#allocation4]  }
  0x12   :  { %15 = dma.vmem_to_smem %s13_s27, 16, %s585_s29, [#allocation2] }
  0x13   :  { %542 = dma.done.wait [#allocation2], 32 }
  0x14   :  { %543 = vsyncadd [#allocation2], 4294967264 }
  0x15   :  { %17 = sfence }
  0x16   :  { %18 = vsyncpa [#allocation6], 0 }
  0x17   :  { %20 = vsyncpa [#allocation6 + $0x1], 0 }
  0x18   :  { %21 = vsyncpa [#allocation7], 0 }
  0x19   :  { %23 = vsyncpa [#allocation7 + $0x1], 0 }
  0x1a   :  { %24 = vsyncpa [#allocation10], 0  ;;  %s630_s0 = smov 0   ;;  %s632_s1 = smov 0  }
  0x1b   :  { %s634_s30 = smov 0   ;;  %s636_s5 = smov 0  }
  0x1c   :  { %s638_s6 = smov 0   ;;  %s640_s7 = smov 0  }
  0x1d   :  { %s642_s8 = smov 0  }
  0x1e LB: > { %s664_s9 = sadd.s32 4294967295, %s582_s8   ;;  %s308_s10 = sadd.s32 4294967294, %s582_s8   ;;  %s582_s8 = sphi %s642_s8, %s882_s8   ;;  %s578_s7 = sphi %s640_s7, %s881_s7   ;;  %s574_s6 = sphi %s638_s6, %s880_s6   ;;  %s570_s5 = sphi %s636_s5, %s879_s5   ;;  %s566_s30 = sphi %s634_s30, %s878_s30   ;;  %s562_s1 = sphi %s632_s1, %s877_s1   ;;  %s558_s0 = sphi %s630_s0, %s876_s0  }
  0x1f   : > { %s668_s11 = sadd.s32 1, %s582_s8   ;;  %s34_s12 = sld [smem:[#allocation3 + %s582_s8]] }
  0x20   : > { %s35_s13 = sld [smem:[#allocation3 + %s668_s11]]  ;;  %s39_s14 = sadd.s32 1, %s578_s7 }
  0x21   : > { %p46_p8 = scmp.ne.s32.totalorder %s578_s7, %s574_s6  ;;  %p47_p9 = scmp.eq.s32.totalorder %s582_s8, 0 }
  0x22   : > { %p52_p10 = scmp.ne.s32.totalorder %s574_s6, %s570_s5  ;;  %p53_p11 = scmp.eq.s32.totalorder %s664_s9, 0 }
  0x23   : > { %p678_p12 = por %p47_p9, %p46_p8  ;;  %s62_s16 = ssub.s32 %s582_s8, %s668_s11 }
  0x24   : > { %p684_p13 = por %p53_p11, %p52_p10  ;;  %p63_p0 = scmp.eq.s32.totalorder %s62_s16, 0 }
  0x25   : > { %s65_s18 = sadd.s32 1, %s566_s30  ;;  %p75_p1 = scmp.ne.s32.totalorder %s566_s30, %s562_s1 }
  0x26   : > { %s863_s17 = scalar_select %p684_p13, 1, 0 }
  0x27   : > { %s36_s19 = ssub.s32 %s34_s12, %s35_s13  ;;  %p859_p2 = scmp.eq.s32.totalorder %s664_s9, 15 }
  0x28   : > { %p37_p3 = scmp.eq.s32.totalorder %s36_s19, 0  ;;  %p81_p4 = scmp.ne.s32.totalorder %s562_s1, %s558_s0 }
  0x29   : > { %s695_s20 = scalar_select %p63_p0, %s566_s30, %s65_s18  }
  0x2a   : > { %s698_s21 = scalar_select %p37_p3, %s578_s7, %s39_s14  }
  0x2b   : > { %p702_p5 = por %p859_p2, %p75_p1  ;;  %p82_p6 = scmp.eq.s32.totalorder %s308_s10, 15 }
  0x2c   : > { %p340_p8 = scmp.lt.s32.totalorder %s582_s8, 16  ;;  %s123_s24 = sand.u32 1, %s578_s7  }
  0x2d   : > { %s864_s22 = scalar_select %p702_p5, 1, 0 }
  0x2e   : > { %p706_p7 = por %p82_p6, %p81_p4  ;;  %p719_p9 = pnand %p340_p8, %p678_p12 }
  0x2f   : > { %s320_s25 = scalar_select %p678_p12, [#allocation3], [#allocation11] }
  0x30   : > { %s865_s23 = scalar_select %p706_p7, 1, 0 }
  0x31   : > { %s321_s26 = scalar_select %p678_p12, %s582_s8, 0 }
  0x32   : > { %s884_s25 = smov (!%p340_p8, %s320_s25), [#allocation12]  ;;  %p312_p10 = scmp.ge.s32.totalorder %s582_s8, 1 }
  0x33   : > { %s886_s26 = smov (!%p340_p8, %s321_s26), 0  ;;  %s126_s29 = scalar_lea.vmem [#allocation5], %s123_s24 }
  0x34   : > { %s127_s28 = sld [smem:[%s884_s25 + %s886_s26]]  ;;  %s134_s5 = sshll.u32 %s126_s29, 4  ;;  %s729_s5 = int_to_ptr.vmem [resolvable:$true] %s134_s5 }
  0x35   : > { %p139_p11 = scmp.lt.s32.totalorder %s582_s8, 17  ;;  %s124_s16 = scalar_lea.sflag [#allocation6], %s123_s24 }
  0x36   : > { %p432_p1 = pneg %p719_p9  ;;  %s435_s26 = scalar_lea.hbm %s855_s2, 2048 }
  0x37   : > { %p725_p0 = pnand %p312_p10, %p139_p11 }
  0x3a   : > { %s311_s12 = sshll.u32 %s127_s28, 4 }
  0x3b   : > { %s734_s15 = scalar_lea.hbm %s855_s2, %s311_s12 }
  0x3c   : > { %s430_s18 = scalar_lea.hbm %s734_s15, 16  ;;  %p436_p6 = scmp.lt.u32.totalorder %s734_s15, %s855_s2 }
  0x3d   : > { %p431_p12 = scmp.ne.s32.totalorder %s734_s15, %s430_s18  ;;  %p437_p8 = scmp.lt.u32.totalorder %s435_s26, %s430_s18 }
  0x3e   : > { %p439_p11 = scmp.lt.u32.totalorder %s430_s18, %s734_s15 }
  0x3f   : > { %p433_p3 = pnand %p432_p1, %p431_p12  ;;  %p438_p10 = por %p437_p8, %p436_p6 }
  0x41   : > { %p434_p4 = pneg %p433_p3  ;;  %p440_p2 = por %p439_p11, %p438_p10 }
  0x43   : > { %p441_p7 = pnand %p440_p2, %p434_p4 }
  0x45   : > { %444 = shalt.err (!%p441_p7)
}
  0x46   : > { %s445_s24 = scalar_lea.vmem %s729_s5, 16  ;;  %s586_s12 = smov [#allocation5]  }
  0x47   : > { %p446_p12 = scmp.ne.s32.totalorder %s729_s5, %s445_s24  ;;  %s450_s13 = sshll.u32 %s586_s12, 4  ;;  %s451_s13 = int_to_ptr.vmem [resolvable:$false] %s450_s13 }
  0x48   : > { %s452_s14 = scalar_lea.vmem %s451_s13, 32  ;;  %p453_p13 = scmp.lt.s32.totalorder %s729_s5, %s451_s13 }
  0x49   : > { %p448_p3 = pnand %p446_p12, %p432_p1  ;;  %p454_p6 = scmp.lt.s32.totalorder %s452_s14, %s445_s24 }
  0x4b   : > { %p449_p5 = pneg %p448_p3  ;;  %p455_p8 = por %p454_p6, %p453_p13 }
  0x4d   : > { %p456_p10 = pnand %p455_p8, %p449_p5 }
  0x4f   : > { %459 = shalt.err (!%p456_p10)
}
  0x50   : > { %335 = dma.hbm_to_vmem [thread:$0]  (!%p719_p9), %s734_s15, 16, %s729_s5, %s124_s16  }
  0x51   : > { %143 = sbr.rel (%p725_p0) target bundleno = 484 (0x1e4), region = 24  ;;  %s145_s18 = sand.u32 (!%p725_p0), 1, %s574_s6  }
  0x52   : > { %s146_s19 = scalar_lea.sflag (!%p725_p0), [#allocation6], %s145_s18  ;;  %s148_s25 = scalar_lea.vmem (!%p725_p0), [#allocation5], %s145_s18 }
  0x53   : > { %p868_p2 = scmp.ne.s32.totalorder (!%p725_p0), %s863_s17, 0 }
  0x58   : > { %545 = dma.done.wait (%p868_p2), %s146_s19, 16  }
  0x59   : > { %547 = vsyncadd (%p868_p2), %s146_s19, 4294967280  ;;  %s163_s26 = sand.u32 1, %s562_s1   ;;  %v168_v0 = vld [vmem:[%s148_s25] sm:$0x1]  ;;  %p313_p13 = scmp.ne.s32.totalorder %s664_s9, 0 }
  0x5a   : > { %s771_s27 = scalar_lea.vmem [#allocation8], %s163_s26  ;;  %vm174_vm0 = vcmask (!%p313_p13), 0   ;;  %v587_v1 = vmov (!%p313_p13), 0.0  }
  0x5b   : > { %169 = vst [vmem:[%s771_s27] sm:$0x1] %v168_v0  ;;  %173 = sbr.rel (%p313_p13) target bundleno = 98 (0x62), region = 32  ;;  %175 = vst.msk [vmem:[#allocation9] sm:$0x1] (!%p313_p13), %vm174_vm0, %v587_v1 }
  0x62 PF: > { %vm176_vm1 = vcmask 1040384   ;;  %s189_s17 = sld [smem:[#allocation4 + %s664_s9]]  ;;  %v190_v3 = vlaneseq  ;;  %v198_v18 = vld [vmem:[#allocation9] sm:$0x1]  ;;  %vm201_vm3 = vcmask 0   ;;  %p314_p5 = scmp.ne.s32.totalorder %s664_s9, 15 }
  0x63   : > { %v177_v2 = vsel %vm176_vm1, %v168_v0, -inf }
  0x64   : > { %178 = vmax.xlane.f32.xlu0 %v177_v2  ;;  %v191_v4 = vand.u32 127, %v190_v3 }
  0x68   : > { %v192_v5 = vstv %s189_s17 }
  0x69   : > { %vm193_vm2 = vcmp.eq.s32.totalorder %v191_v4, %v192_v5 }
  0x6a   : > { %v194_v6 = vsel %vm193_vm2, %v168_v0, 0.0 }
  0x6b   : > { %v195_v7 = vsel %vm176_vm1, %v194_v6, 0.0 }
  0x6c   : > { %196 = vadd.xlane.f32.xlu1 %v195_v7 }
  0xf1   : > { %v179_v8 = vpop.xlane.xlu0 %178 }
  0xf2   : > { %v180_v9 = vsub.f32 %v168_v0, %v179_v8 }
  0xf4   : > { %v181_v10 = vmul.f32 1.442695, %v180_v9 }
  0xf6   : > { %404 = vpow2.f32 %v181_v10 }
  0xf9   : > { %v197_v16 = vpop.xlane.xlu1 %196 }
 0x100   : > { %v405_v11 = vpop.eup %404 }
 0x101   : > { %v183_v12 = vsel %vm176_vm1, %v405_v11, 0.0 }
 0x102   : > { %184 = vadd.xlane.f32.xlu0 %v183_v12 }
 0x18f   : > { %v185_v13 = vpop.xlane.xlu0 %184 }
 0x190   : > { %406 = vlog2.f32 %v185_v13 }
 0x19a   : > { %v407_v14 = vpop.eup %406 }
 0x19b   : > { %v187_v15 = vmul.f32 0.6931472, %v407_v14 }
 0x19d   : > { %v188_v17 = vadd.f32 %v187_v15, %v179_v8  ;;  %206 = sbr.rel (%p314_p5) target bundleno = 430 (0x1ae), region = 36 }
 0x19f   : > { %v199_v19 = vsub.f32 %v188_v17, %v197_v16 }
 0x1a1   : > { %v200_v20 = vadd.f32 %v199_v19, %v198_v18 }
 0x1a3   : > { %202 = vst.msk [vmem:[#allocation9] sm:$0x1] %vm201_vm3, %v200_v20 }
 0x1aa   : > { %v207_v21 = vld [vmem:[#allocation9] sm:$0x1] }
 0x1ab   : > { %v208_v22 = vmul.f32 0.0625, %v207_v21 }
 0x1ad   : > { %209 = vst.msk [vmem:[#allocation9] sm:$0x1] %vm201_vm3, %v208_v22 }
 0x1ae PF: > { %s315_s5 = sshll.u32 %s664_s9, 4  ;;  %s223_s28 = sshll.u32 %s771_s27, 4  ;;  %s224_s28 = int_to_ptr.vmem [resolvable:$true] %s223_s28 }
 0x1af   : > { %s784_s16 = scalar_lea.hbm %s856_s3, %s315_s5  ;;  %s211_s29 = scalar_lea.sflag [#allocation7], %s163_s26 }
 0x1b0   : > { %s460_s24 = scalar_lea.vmem %s224_s28, 16  ;;  %p869_p9 = scmp.ne.s32.totalorder %s864_s22, 0 }
 0x1b1   : > { %p461_p7 = scmp.ne.s32.totalorder %s224_s28, %s460_s24  ;;  %s588_s12 = smov [#allocation8]  }
 0x1b2   : > { %s464_s13 = sshll.u32 %s588_s12, 4  ;;  %s465_s13 = int_to_ptr.vmem [resolvable:$false] %s464_s13 }
 0x1b3   : > { %p462_p0 = pnand %p461_p7, %p869_p9  ;;  %s466_s14 = scalar_lea.vmem %s465_s13, 32 }
 0x1b4   : > { %p467_p4 = scmp.lt.s32.totalorder %s224_s28, %s465_s13  ;;  %p468_p11 = scmp.lt.s32.totalorder %s466_s14, %s460_s24 }
 0x1b5   : > { %p463_p1 = pneg %p462_p0 }
 0x1b6   : > { %p469_p12 = por %p468_p11, %p467_p4 }
 0x1b8   : > { %p470_p3 = pnand %p469_p12, %p463_p1 }
 0x1ba   : > { %473 = shalt.err (!%p470_p3)
}
 0x1bb   : > { %s474_s18 = scalar_lea.hbm %s784_s16, 16  ;;  %s478_s26 = scalar_lea.hbm %s856_s3, 256 }
 0x1bc   : > { %p475_p6 = scmp.ne.s32.totalorder %s784_s16, %s474_s18  ;;  %p479_p2 = scmp.lt.u32.totalorder %s784_s16, %s856_s3 }
 0x1bd   : > { %p480_p13 = scmp.lt.u32.totalorder %s478_s26, %s474_s18  ;;  %p482_p7 = scmp.lt.u32.totalorder %s474_s18, %s784_s16 }
 0x1be   : > { %p476_p8 = pnand %p475_p6, %p869_p9 }
 0x1bf   : > { %p481_p5 = por %p480_p13, %p479_p2 }
 0x1c0   : > { %p477_p10 = pneg %p476_p8 }
 0x1c1   : > { %p483_p0 = por %p482_p7, %p481_p5 }
 0x1c3   : > { %p484_p1 = pnand %p483_p0, %p477_p10 }
 0x1c5   : > { %487 = shalt.err (!%p484_p1)
}
 0x1c6   : > { %324 = dma.vmem_to_hbm [thread:$0]  (%p869_p9), %s224_s28, 16, %s784_s16, %s211_s29  }
 0x1c7   : > { %s589_s5 = smov [#allocation9]   ;;  %p870_p11 = scmp.eq.s32.totalorder %s664_s9, 15 }
 0x1c8   : > { %s234_s10 = sshll.u32 %s589_s5, 4  ;;  %s235_s10 = int_to_ptr.vmem [resolvable:$true] %s234_s10 }
 0x1c9   : > { %s488_s15 = scalar_lea.vmem %s235_s10, 16  ;;  %s494_s24 = scalar_lea.vmem %s235_s10, 32 }
 0x1ca   : > { %p489_p4 = scmp.ne.s32.totalorder %s235_s10, %s488_s15  ;;  %p495_p6 = scmp.lt.s32.totalorder %s235_s10, %s235_s10 }
 0x1cb   : > { %p496_p8 = scmp.lt.s32.totalorder %s494_s24, %s488_s15 }
 0x1cc   : > { %p490_p12 = pnand %p489_p4, %p870_p11 }
 0x1cd   : > { %p497_p2 = por %p496_p8, %p495_p6 }
 0x1ce   : > { %p491_p3 = pneg %p490_p12 }
 0x1d0   : > { %p498_p13 = pnand %p497_p2, %p491_p3 }
 0x1d2   : > { %501 = shalt.err (!%p498_p13)
}
 0x1d3   : > { %s502_s22 = scalar_lea.hbm %s857_s4, 16  ;;  %p871_p10 = pmov %p870_p11 }
 0x1d4   : > { %p503_p9 = scmp.ne.s32.totalorder %s857_s4, %s502_s22  ;;  %p508_p0 = scmp.lt.u32.totalorder %s502_s22, %s857_s4 }
 0x1d6   : > { %p504_p5 = pnand %p503_p9, %p871_p10 }
 0x1d8   : > { %p505_p7 = pneg %p504_p5 }
 0x1da   : > { %p510_p1 = pnand %p508_p0, %p505_p7 }
 0x1dc   : > { %513 = shalt.err (!%p510_p1)
}
 0x1dd   : > { %p872_p4 = pmov %p871_p10 }
 0x1df   : > { %326 = dma.vmem_to_hbm [thread:$0]  (%p872_p4), %s235_s10, 16, %s857_s4, [#allocation10]  }
 0x1e0   : > { %p873_p11 = pmov %p872_p4 }
 0x1e1   : > { %p874_p12 = pmov %p872_p4 }
 0x1e2   : > { %549 = dma.done.wait (%p873_p11), [#allocation10], 16  }
 0x1e3   : > { %551 = vsyncadd (%p874_p12), [#allocation10], 4294967280 }
 0x1e4 PF: > { %p343_p3 = scmp.ge.s32.totalorder %s582_s8, 2  ;;  %s250_s25 = sand.u32 1, %s558_s0  }
 0x1e5   : > { %p875_p6 = scmp.ne.s32.totalorder %s865_s23, 0  ;;  %s251_s26 = scalar_lea.sflag [#allocation7], %s250_s25 }
 0x1e7   : > { %p337_p8 = pnand %p343_p3, %p875_p6 }
 0x1e9   : > { %553 = dma.done.wait (!%p337_p8), %s251_s26, 16  }
 0x1ea   : > { %555 = vsyncadd (!%p337_p8), %s251_s26, 4294967280  ;;  %p27_p2 = scmp.ge.s32.totalorder %s668_s11, 18   ;;  %s876_s0 = smov %s562_s1 }
 0x1eb   : > { %s877_s1 = smov %s566_s30  ;;  %s878_s30 = smov %s695_s20 }
 0x1ec   : > { %s879_s5 = smov %s574_s6  ;;  %s880_s6 = smov %s578_s7 }
 0x1ed   : > { %s881_s7 = smov %s698_s21  ;;  %s882_s8 = smov %s668_s11 }
 0x1ee   :  { %29 = sbr.rel (!%p27_p2) target bundleno = 30 (0x1e), region = 85 }
 0x1f5   :  { %255 = vsyncpa [#allocation6], 1 }
 0x1f6   :  { %257 = vsyncpa [#allocation6 + $0x1], 1 }
 0x1f7   :  { %258 = vsyncpa [#allocation7], 1 }
 0x1f8   :  { %260 = vsyncpa [#allocation7 + $0x1], 1 }
 0x1f9   :  { %261 = vsyncpa [#allocation10], 1 }

</bundles_post_ra>
